<compile_context>
chip_gen: v7x
topology: tpu7x:2x2x1
jax: 0.10.0
libtpu: 0.0.40
codegen_flags: <defaults>
</compile_context>

<pallas_src>
import functools

import jax
import jax.numpy as jnp
from jax.experimental import pallas as pl
from jax.experimental.pallas import tpu as pltpu


def _round_up(x, m):
    return (x + m - 1) // m * m


def _tensorcores_per_chip():
    """Best-effort TC-per-chip query: 2 on v7x-class chips, else 1."""
    try:
        kind = jax.devices()[0].device_kind.lower()
    except Exception:
        return 1
    return 2 if "7" in kind else 1


# ----------------------------- Pallas kernel --------------------------------
def conv_fused_kernel(x_ref, w_ref, b_ref, o_ref, tap_ref, *, W, KH, KW):
    """Fused in-VMEM im2col + single K = KH*KW*IC GEMM, lane-dense output.

    x_ref   : (IP, IC, L_in)       zero-padded flattened images (per step)
    w_ref   : (OC_pad, KH*KW*IC)   stacked conv weights (grid-invariant)
    b_ref   : (OC_pad, 1)          bias column (grid-invariant)
    o_ref   : (IP, OC_pad, L_out)  out_T[n, oc, oh*W + ow], L_out % 128 == 0
    tap_ref : (KH*KW*IC, L_out)    VMEM scratch: assembled GEMM operand
    """
    ip, oc_pad, l_out = o_ref.shape
    ic = x_ref.shape[1]
    for n in range(ip):                        # static; ip is 1 or N (tiny)
        # Assemble the KH*KW shifted tap views into one (27, L_out) operand:
        # row t*IC + c  <->  x[c, l + kh*W + kw]  with t = kh*KW + kw.
        for t in range(KH * KW):
            kh, kw = divmod(t, KW)
            s = kh * W + kw                    # static flat offset of tap t
            tap_ref[t * ic:(t + 1) * ic, :] = x_ref[n, :, s:s + l_out]
        # One MXU matmul (K = 27) instead of nine chained K = 3 dots.
        # Default f32 matmul precision; for strict f32 parity with PyTorch
        # consider precision=HIGHEST (extra MXU passes).
        acc = jnp.dot(w_ref[...], tap_ref[...],
                      preferred_element_type=jnp.float32)
        o_ref[n, :, :] = (acc + b_ref[...]).astype(o_ref.dtype)


def conv2d_gemm_t(x_flat, w_mat, b_col, *, W, KH, KW, L_out, images_per_step):
    """pallas_call wrapper: lane-dense transposed output, batch-aware grid."""
    N, IC, L_in = x_flat.shape
    OC_pad, KKIC = w_mat.shape
    grid_n = N // images_per_step
    kernel = functools.partial(conv_fused_kernel, W=W, KH=KH, KW=KW)
    return pl.pallas_call(
        kernel,
        out_shape=jax.ShapeDtypeStruct((N, OC_pad, L_out), jnp.float32),
        grid=(grid_n,),
        in_specs=[
            # Last two dims equal full array dims -> (8,128) rule satisfied.
            pl.BlockSpec((images_per_step, IC, L_in), lambda n: (n, 0, 0)),
            pl.BlockSpec((OC_pad, KKIC), lambda n: (0, 0)),       # resident
            pl.BlockSpec((OC_pad, 1), lambda n: (0, 0)),          # resident
        ],
        out_specs=pl.BlockSpec((images_per_step, OC_pad, L_out),
                               lambda n: (n, 0, 0)),
        scratch_shapes=[pltpu.VMEM((KKIC, L_out), jnp.float32)],
        compiler_params=pltpu.CompilerParams(
            dimension_semantics=("parallel",)),
    )(x_flat, w_mat, b_col)


# ------------------------------ JAX wrapper ----------------------------------
def conv2d_forward(x, weight, bias):
    """Equivalent of Model.forward: Conv2d(3, 6, k=3, stride=1, pad=0).

    x      : (N, IC, H, W)    float32, NCHW
    weight : (OC, IC, KH, KW) float32
    bias   : (OC,)            float32
    returns: (N, OC, H-KH+1, W-KW+1) float32, NCHW
    """
    N, IC, H, W = x.shape
    OC, IC_w, KH, KW = weight.shape
    assert IC == IC_w
    OH, OW = H - KH + 1, W - KW + 1

    OC_pad = _round_up(OC, 8)                   # sublane-aligned output rows
    L_out = _round_up(OH * W, 128)              # lane-dense output length
    L_in = L_out + (KH - 1) * W + (KW - 1)      # exact; no 128 round-up

    # Flatten spatial dims (free for contiguous NCHW) and zero-pad the flat
    # axis so every shifted tap window stays in bounds (~1x input HBM bytes).
    x_flat = jnp.pad(x.reshape(N, IC, H * W),
                     ((0, 0), (0, 0), (0, L_in - H * W)))

    # (OC, IC, KH, KW) -> (OC_pad, KH*KW*IC), column order (kh, kw, c),
    # matching the tap-operand row ordering inside the kernel.  Tiny, once.
    w_mat = jnp.transpose(weight, (0, 2, 3, 1)).reshape(OC, KH * KW * IC)
    w_mat = jnp.pad(w_mat, ((0, OC_pad - OC), (0, 0)))
    b_col = jnp.pad(bias.reshape(OC, 1), ((0, OC_pad - OC), (0, 0)))

    # Single-TC chips (v5e/v6e): whole batch in one grid step (no per-step
    # overhead).  Multi-TC chips (v7x): one image per step, sharded per core.
    images_per_step = 1 if (_tensorcores_per_chip() > 1 and N > 1) else N

    out_t = conv2d_gemm_t(x_flat, w_mat, b_col, W=W, KH=KH, KW=KW,
                          L_out=L_out, images_per_step=images_per_step)

    # out_t[n, oc, oh*W + ow] holds the conv result for ow < OW; recover NCHW
    # with slices + a free reshape (padded OC rows / tail lanes are dropped).
    return out_t[:, :OC, :OH * W].reshape(N, OC, OH, W)[:, :, :, :OW]


# ------------------------------- main ----------------------------------------
if __name__ == "__main__":
    key = jax.random.PRNGKey(0)
    k_x, k_w, k_b = jax.random.split(key, 3)

    N, IC, H, W = 2, 3, 16, 16
    OC, KH, KW = 6, 3, 3

    x = jax.random.normal(k_x, (N, IC, H, W), dtype=jnp.float32)

    # Deterministic parameter init (PyTorch-style uniform in +-1/sqrt(fan_in)).
    fan_in = IC * KH * KW
    bound = 1.0 / jnp.sqrt(jnp.float32(fan_in))
    weight = jax.random.uniform(k_w, (OC, IC, KH, KW), jnp.float32, -bound, bound)
    bias = jax.random.uniform(k_b, (OC,), jnp.float32, -bound, bound)

    conv2d = jax.jit(conv2d_forward)
    y = jax.block_until_ready(conv2d(x, weight, bias))

    # Sanity check against XLA's native convolution.
    y_ref = jax.lax.conv_general_dilated(
        x, weight, window_strides=(1, 1), padding="VALID",
        dimension_numbers=("NCHW", "OIHW", "NCHW"),
    ) + bias.reshape(1, OC, 1, 1)
    assert y.shape == (N, OC, H - KH + 1, W - KW + 1)
    assert jnp.allclose(y, y_ref, atol=1e-4, rtol=1e-4)

    print("KERNEL_OK")
</pallas_src>

<mosaic_0001>
module attributes {stable_mosaic.version = 11 : i64} {
  func.func @conv_fused_kernel(%arg0: i32, %arg1: memref<2x3x290xf32, #tpu.memory_space<vmem>>, %arg2: memref<8x27xf32, #tpu.memory_space<vmem>>, %arg3: memref<8x1xf32, #tpu.memory_space<vmem>>, %arg4: memref<2x8x256xf32, #tpu.memory_space<vmem>>, %arg5: memref<27x256xf32, #tpu.memory_space<vmem>>) attributes {dimension_semantics = [#tpu.dimension_semantics<parallel>], iteration_bounds = array<i64: 1>, scalar_prefetch = 0 : i64, scratch_operands = 1 : i64, tpu.core_type = #tpu.core_type<tc>, window_params = [{transform_indices = @transform_0, window_bounds = array<i64: 2, 3, 290>}, {pipeline_mode = #tpu.pipeline_mode<synchronous>, transform_indices = @transform_1, window_bounds = array<i64: 8, 27>}, {pipeline_mode = #tpu.pipeline_mode<synchronous>, transform_indices = @transform_2, window_bounds = array<i64: 8, 1>}, {transform_indices = @transform_3, window_bounds = array<i64: 2, 8, 256>}]} {
    %c0 = arith.constant 0 : index
    %c0_0 = arith.constant 0 : index
    %c0_1 = arith.constant 0 : index
    %0 = vector.load %arg1[%c0, %c0_0, %c0_1] : memref<2x3x290xf32, #tpu.memory_space<vmem>>, vector<1x3x256xf32>
    %1 = vector.shape_cast %0 : vector<1x3x256xf32> to vector<3x256xf32>
    %c0_2 = arith.constant 0 : index
    %c0_3 = arith.constant 0 : index
    %2 = vector.load %arg5[%c0_2, %c0_3] : memref<27x256xf32, #tpu.memory_space<vmem>>, vector<3x256xf32>
    tpu.vector_store %arg5[%c0_2, %c0_3], %1 {strides = array<i32>} : memref<27x256xf32, #tpu.memory_space<vmem>>, vector<3x256xf32>,
    %c0_4 = arith.constant 0 : index
    %c0_5 = arith.constant 0 : index
    %c1 = arith.constant 1 : index
    %3 = vector.load %arg1[%c0_4, %c0_5, %c1] : memref<2x3x290xf32, #tpu.memory_space<vmem>>, vector<1x3x256xf32>
    %4 = vector.shape_cast %3 : vector<1x3x256xf32> to vector<3x256xf32>
    %c3 = arith.constant 3 : index
    %c0_6 = arith.constant 0 : index
    %5 = vector.load %arg5[%c3, %c0_6] : memref<27x256xf32, #tpu.memory_space<vmem>>, vector<3x256xf32>
    tpu.vector_store %arg5[%c3, %c0_6], %4 {strides = array<i32>} : memref<27x256xf32, #tpu.memory_space<vmem>>, vector<3x256xf32>,
    %c0_7 = arith.constant 0 : index
    %c0_8 = arith.constant 0 : index
    %c2 = arith.constant 2 : index
    %6 = vector.load %arg1[%c0_7, %c0_8, %c2] : memref<2x3x290xf32, #tpu.memory_space<vmem>>, vector<1x3x256xf32>
    %7 = vector.shape_cast %6 : vector<1x3x256xf32> to vector<3x256xf32>
    %c6 = arith.constant 6 : index
    %c0_9 = arith.constant 0 : index
    %8 = vector.load %arg5[%c6, %c0_9] : memref<27x256xf32, #tpu.memory_space<vmem>>, vector<3x256xf32>
    tpu.vector_store %arg5[%c6, %c0_9], %7 {strides = array<i32>} : memref<27x256xf32, #tpu.memory_space<vmem>>, vector<3x256xf32>,
    %c0_10 = arith.constant 0 : index
    %c0_11 = arith.constant 0 : index
    %c16 = arith.constant 16 : index
    %9 = vector.load %arg1[%c0_10, %c0_11, %c16] : memref<2x3x290xf32, #tpu.memory_space<vmem>>, vector<1x3x256xf32>
    %10 = vector.shape_cast %9 : vector<1x3x256xf32> to vector<3x256xf32>
    %c9 = arith.constant 9 : index
    %c0_12 = arith.constant 0 : index
    %11 = vector.load %arg5[%c9, %c0_12] : memref<27x256xf32, #tpu.memory_space<vmem>>, vector<3x256xf32>
    tpu.vector_store %arg5[%c9, %c0_12], %10 {strides = array<i32>} : memref<27x256xf32, #tpu.memory_space<vmem>>, vector<3x256xf32>,
    %c0_13 = arith.constant 0 : index
    %c0_14 = arith.constant 0 : index
    %c17 = arith.constant 17 : index
    %12 = vector.load %arg1[%c0_13, %c0_14, %c17] : memref<2x3x290xf32, #tpu.memory_space<vmem>>, vector<1x3x256xf32>
    %13 = vector.shape_cast %12 : vector<1x3x256xf32> to vector<3x256xf32>
    %c12 = arith.constant 12 : index
    %c0_15 = arith.constant 0 : index
    %14 = vector.load %arg5[%c12, %c0_15] : memref<27x256xf32, #tpu.memory_space<vmem>>, vector<3x256xf32>
    tpu.vector_store %arg5[%c12, %c0_15], %13 {strides = array<i32>} : memref<27x256xf32, #tpu.memory_space<vmem>>, vector<3x256xf32>,
    %c0_16 = arith.constant 0 : index
    %c0_17 = arith.constant 0 : index
    %c18 = arith.constant 18 : index
    %15 = vector.load %arg1[%c0_16, %c0_17, %c18] : memref<2x3x290xf32, #tpu.memory_space<vmem>>, vector<1x3x256xf32>
    %16 = vector.shape_cast %15 : vector<1x3x256xf32> to vector<3x256xf32>
    %c15 = arith.constant 15 : index
    %c0_18 = arith.constant 0 : index
    %17 = vector.load %arg5[%c15, %c0_18] : memref<27x256xf32, #tpu.memory_space<vmem>>, vector<3x256xf32>
    tpu.vector_store %arg5[%c15, %c0_18], %16 {strides = array<i32>} : memref<27x256xf32, #tpu.memory_space<vmem>>, vector<3x256xf32>,
    %c0_19 = arith.constant 0 : index
    %c0_20 = arith.constant 0 : index
    %c32 = arith.constant 32 : index
    %18 = vector.load %arg1[%c0_19, %c0_20, %c32] : memref<2x3x290xf32, #tpu.memory_space<vmem>>, vector<1x3x256xf32>
    %19 = vector.shape_cast %18 : vector<1x3x256xf32> to vector<3x256xf32>
    %c18_21 = arith.constant 18 : index
    %c0_22 = arith.constant 0 : index
    %20 = vector.load %arg5[%c18_21, %c0_22] : memref<27x256xf32, #tpu.memory_space<vmem>>, vector<3x256xf32>
    tpu.vector_store %arg5[%c18_21, %c0_22], %19 {strides = array<i32>} : memref<27x256xf32, #tpu.memory_space<vmem>>, vector<3x256xf32>,
    %c0_23 = arith.constant 0 : index
    %c0_24 = arith.constant 0 : index
    %c33 = arith.constant 33 : index
    %21 = vector.load %arg1[%c0_23, %c0_24, %c33] : memref<2x3x290xf32, #tpu.memory_space<vmem>>, vector<1x3x256xf32>
    %22 = vector.shape_cast %21 : vector<1x3x256xf32> to vector<3x256xf32>
    %c21 = arith.constant 21 : index
    %c0_25 = arith.constant 0 : index
    %23 = vector.load %arg5[%c21, %c0_25] : memref<27x256xf32, #tpu.memory_space<vmem>>, vector<3x256xf32>
    tpu.vector_store %arg5[%c21, %c0_25], %22 {strides = array<i32>} : memref<27x256xf32, #tpu.memory_space<vmem>>, vector<3x256xf32>,
    %c0_26 = arith.constant 0 : index
    %c0_27 = arith.constant 0 : index
    %c34 = arith.constant 34 : index
    %24 = vector.load %arg1[%c0_26, %c0_27, %c34] : memref<2x3x290xf32, #tpu.memory_space<vmem>>, vector<1x3x256xf32>
    %25 = vector.shape_cast %24 : vector<1x3x256xf32> to vector<3x256xf32>
    %c24 = arith.constant 24 : index
    %c0_28 = arith.constant 0 : index
    %26 = vector.load %arg5[%c24, %c0_28] : memref<27x256xf32, #tpu.memory_space<vmem>>, vector<3x256xf32>
    tpu.vector_store %arg5[%c24, %c0_28], %25 {strides = array<i32>} : memref<27x256xf32, #tpu.memory_space<vmem>>, vector<3x256xf32>,
    %c0_29 = arith.constant 0 : index
    %c0_30 = arith.constant 0 : index
    %27 = vector.load %arg2[%c0_29, %c0_30] : memref<8x27xf32, #tpu.memory_space<vmem>>, vector<8x27xf32>
    %c0_31 = arith.constant 0 : index
    %c0_32 = arith.constant 0 : index
    %28 = vector.load %arg5[%c0_31, %c0_32] : memref<27x256xf32, #tpu.memory_space<vmem>>, vector<27x256xf32>
    %cst = arith.constant dense<0.000000e+00> : vector<8x256xf32>
    %29 = tpu.matmul %27, %28, %cst {dimension_numbers = #tpu.dot_dimension_numbers<[1], [0], [0], [1], [0, 0, 1, 1], [], []>} : vector<8x27xf32>, vector<27x256xf32>, vector<8x256xf32> -> vector<8x256xf32>
    %c0_33 = arith.constant 0 : index
    %c0_34 = arith.constant 0 : index
    %30 = vector.load %arg3[%c0_33, %c0_34] : memref<8x1xf32, #tpu.memory_space<vmem>>, vector<8x1xf32>
    %31 = vector.broadcast %30 : vector<8x1xf32> to vector<8x256xf32>
    %32 = arith.addf %29, %31 : vector<8x256xf32>
    %c0_35 = arith.constant 0 : index
    %c0_36 = arith.constant 0 : index
    %c0_37 = arith.constant 0 : index
    %33 = vector.load %arg4[%c0_35, %c0_36, %c0_37] : memref<2x8x256xf32, #tpu.memory_space<vmem>>, vector<1x8x256xf32>
    %34 = vector.shape_cast %33 : vector<1x8x256xf32> to vector<8x256xf32>
    %35 = vector.shape_cast %32 : vector<8x256xf32> to vector<1x8x256xf32>
    tpu.vector_store %arg4[%c0_35, %c0_36, %c0_37], %35 {strides = array<i32>} : memref<2x8x256xf32, #tpu.memory_space<vmem>>, vector<1x8x256xf32>,
    %c1_38 = arith.constant 1 : index
    %c0_39 = arith.constant 0 : index
    %c0_40 = arith.constant 0 : index
    %36 = vector.load %arg1[%c1_38, %c0_39, %c0_40] : memref<2x3x290xf32, #tpu.memory_space<vmem>>, vector<1x3x256xf32>
    %37 = vector.shape_cast %36 : vector<1x3x256xf32> to vector<3x256xf32>
    %c0_41 = arith.constant 0 : index
    %c0_42 = arith.constant 0 : index
    %38 = vector.load %arg5[%c0_41, %c0_42] : memref<27x256xf32, #tpu.memory_space<vmem>>, vector<3x256xf32>
    tpu.vector_store %arg5[%c0_41, %c0_42], %37 {strides = array<i32>} : memref<27x256xf32, #tpu.memory_space<vmem>>, vector<3x256xf32>,
    %c1_43 = arith.constant 1 : index
    %c0_44 = arith.constant 0 : index
    %c1_45 = arith.constant 1 : index
    %39 = vector.load %arg1[%c1_43, %c0_44, %c1_45] : memref<2x3x290xf32, #tpu.memory_space<vmem>>, vector<1x3x256xf32>
    %40 = vector.shape_cast %39 : vector<1x3x256xf32> to vector<3x256xf32>
    %c3_46 = arith.constant 3 : index
    %c0_47 = arith.constant 0 : index
    %41 = vector.load %arg5[%c3_46, %c0_47] : memref<27x256xf32, #tpu.memory_space<vmem>>, vector<3x256xf32>
    tpu.vector_store %arg5[%c3_46, %c0_47], %40 {strides = array<i32>} : memref<27x256xf32, #tpu.memory_space<vmem>>, vector<3x256xf32>,
    %c1_48 = arith.constant 1 : index
    %c0_49 = arith.constant 0 : index
    %c2_50 = arith.constant 2 : index
    %42 = vector.load %arg1[%c1_48, %c0_49, %c2_50] : memref<2x3x290xf32, #tpu.memory_space<vmem>>, vector<1x3x256xf32>
    %43 = vector.shape_cast %42 : vector<1x3x256xf32> to vector<3x256xf32>
    %c6_51 = arith.constant 6 : index
    %c0_52 = arith.constant 0 : index
    %44 = vector.load %arg5[%c6_51, %c0_52] : memref<27x256xf32, #tpu.memory_space<vmem>>, vector<3x256xf32>
    tpu.vector_store %arg5[%c6_51, %c0_52], %43 {strides = array<i32>} : memref<27x256xf32, #tpu.memory_space<vmem>>, vector<3x256xf32>,
    %c1_53 = arith.constant 1 : index
    %c0_54 = arith.constant 0 : index
    %c16_55 = arith.constant 16 : index
    %45 = vector.load %arg1[%c1_53, %c0_54, %c16_55] : memref<2x3x290xf32, #tpu.memory_space<vmem>>, vector<1x3x256xf32>
    %46 = vector.shape_cast %45 : vector<1x3x256xf32> to vector<3x256xf32>
    %c9_56 = arith.constant 9 : index
    %c0_57 = arith.constant 0 : index
    %47 = vector.load %arg5[%c9_56, %c0_57] : memref<27x256xf32, #tpu.memory_space<vmem>>, vector<3x256xf32>
    tpu.vector_store %arg5[%c9_56, %c0_57], %46 {strides = array<i32>} : memref<27x256xf32, #tpu.memory_space<vmem>>, vector<3x256xf32>,
    %c1_58 = arith.constant 1 : index
    %c0_59 = arith.constant 0 : index
    %c17_60 = arith.constant 17 : index
    %48 = vector.load %arg1[%c1_58, %c0_59, %c17_60] : memref<2x3x290xf32, #tpu.memory_space<vmem>>, vector<1x3x256xf32>
    %49 = vector.shape_cast %48 : vector<1x3x256xf32> to vector<3x256xf32>
    %c12_61 = arith.constant 12 : index
    %c0_62 = arith.constant 0 : index
    %50 = vector.load %arg5[%c12_61, %c0_62] : memref<27x256xf32, #tpu.memory_space<vmem>>, vector<3x256xf32>
    tpu.vector_store %arg5[%c12_61, %c0_62], %49 {strides = array<i32>} : memref<27x256xf32, #tpu.memory_space<vmem>>, vector<3x256xf32>,
    %c1_63 = arith.constant 1 : index
    %c0_64 = arith.constant 0 : index
    %c18_65 = arith.constant 18 : index
    %51 = vector.load %arg1[%c1_63, %c0_64, %c18_65] : memref<2x3x290xf32, #tpu.memory_space<vmem>>, vector<1x3x256xf32>
    %52 = vector.shape_cast %51 : vector<1x3x256xf32> to vector<3x256xf32>
    %c15_66 = arith.constant 15 : index
    %c0_67 = arith.constant 0 : index
    %53 = vector.load %arg5[%c15_66, %c0_67] : memref<27x256xf32, #tpu.memory_space<vmem>>, vector<3x256xf32>
    tpu.vector_store %arg5[%c15_66, %c0_67], %52 {strides = array<i32>} : memref<27x256xf32, #tpu.memory_space<vmem>>, vector<3x256xf32>,
    %c1_68 = arith.constant 1 : index
    %c0_69 = arith.constant 0 : index
    %c32_70 = arith.constant 32 : index
    %54 = vector.load %arg1[%c1_68, %c0_69, %c32_70] : memref<2x3x290xf32, #tpu.memory_space<vmem>>, vector<1x3x256xf32>
    %55 = vector.shape_cast %54 : vector<1x3x256xf32> to vector<3x256xf32>
    %c18_71 = arith.constant 18 : index
    %c0_72 = arith.constant 0 : index
    %56 = vector.load %arg5[%c18_71, %c0_72] : memref<27x256xf32, #tpu.memory_space<vmem>>, vector<3x256xf32>
    tpu.vector_store %arg5[%c18_71, %c0_72], %55 {strides = array<i32>} : memref<27x256xf32, #tpu.memory_space<vmem>>, vector<3x256xf32>,
    %c1_73 = arith.constant 1 : index
    %c0_74 = arith.constant 0 : index
    %c33_75 = arith.constant 33 : index
    %57 = vector.load %arg1[%c1_73, %c0_74, %c33_75] : memref<2x3x290xf32, #tpu.memory_space<vmem>>, vector<1x3x256xf32>
    %58 = vector.shape_cast %57 : vector<1x3x256xf32> to vector<3x256xf32>
    %c21_76 = arith.constant 21 : index
    %c0_77 = arith.constant 0 : index
    %59 = vector.load %arg5[%c21_76, %c0_77] : memref<27x256xf32, #tpu.memory_space<vmem>>, vector<3x256xf32>
    tpu.vector_store %arg5[%c21_76, %c0_77], %58 {strides = array<i32>} : memref<27x256xf32, #tpu.memory_space<vmem>>, vector<3x256xf32>,
    %c1_78 = arith.constant 1 : index
    %c0_79 = arith.constant 0 : index
    %c34_80 = arith.constant 34 : index
    %60 = vector.load %arg1[%c1_78, %c0_79, %c34_80] : memref<2x3x290xf32, #tpu.memory_space<vmem>>, vector<1x3x256xf32>
    %61 = vector.shape_cast %60 : vector<1x3x256xf32> to vector<3x256xf32>
    %c24_81 = arith.constant 24 : index
    %c0_82 = arith.constant 0 : index
    %62 = vector.load %arg5[%c24_81, %c0_82] : memref<27x256xf32, #tpu.memory_space<vmem>>, vector<3x256xf32>
    tpu.vector_store %arg5[%c24_81, %c0_82], %61 {strides = array<i32>} : memref<27x256xf32, #tpu.memory_space<vmem>>, vector<3x256xf32>,
    %c0_83 = arith.constant 0 : index
    %c0_84 = arith.constant 0 : index
    %63 = vector.load %arg2[%c0_83, %c0_84] : memref<8x27xf32, #tpu.memory_space<vmem>>, vector<8x27xf32>
    %c0_85 = arith.constant 0 : index
    %c0_86 = arith.constant 0 : index
    %64 = vector.load %arg5[%c0_85, %c0_86] : memref<27x256xf32, #tpu.memory_space<vmem>>, vector<27x256xf32>
    %cst_87 = arith.constant dense<0.000000e+00> : vector<8x256xf32>
    %65 = tpu.matmul %63, %64, %cst_87 {dimension_numbers = #tpu.dot_dimension_numbers<[1], [0], [0], [1], [0, 0, 1, 1], [], []>} : vector<8x27xf32>, vector<27x256xf32>, vector<8x256xf32> -> vector<8x256xf32>
    %c0_88 = arith.constant 0 : index
    %c0_89 = arith.constant 0 : index
    %66 = vector.load %arg3[%c0_88, %c0_89] : memref<8x1xf32, #tpu.memory_space<vmem>>, vector<8x1xf32>
    %67 = vector.broadcast %66 : vector<8x1xf32> to vector<8x256xf32>
    %68 = arith.addf %65, %67 : vector<8x256xf32>
    %c1_90 = arith.constant 1 : index
    %c0_91 = arith.constant 0 : index
    %c0_92 = arith.constant 0 : index
    %69 = vector.load %arg4[%c1_90, %c0_91, %c0_92] : memref<2x8x256xf32, #tpu.memory_space<vmem>>, vector<1x8x256xf32>
    %70 = vector.shape_cast %69 : vector<1x8x256xf32> to vector<8x256xf32>
    %71 = vector.shape_cast %68 : vector<8x256xf32> to vector<1x8x256xf32>
    tpu.vector_store %arg4[%c1_90, %c0_91, %c0_92], %71 {strides = array<i32>} : memref<2x8x256xf32, #tpu.memory_space<vmem>>, vector<1x8x256xf32>,
    return
  }
  func.func @transform_0(%arg0: i32) -> (i32, i32, i32) {
    %c0_i32 = arith.constant 0 : i32
    %c0_i32_0 = arith.constant 0 : i32
    %c0_i32_1 = arith.constant 0 : i32
    return %arg0, %c0_i32, %c0_i32_0 : i32, i32, i32
  }
  func.func @transform_1(%arg0: i32) -> (i32, i32) {
    %c0_i32 = arith.constant 0 : i32
    %c0_i32_0 = arith.constant 0 : i32
    %c0_i32_1 = arith.constant 0 : i32
    return %c0_i32, %c0_i32_0 : i32, i32
  }
  func.func @transform_2(%arg0: i32) -> (i32, i32) {
    %c0_i32 = arith.constant 0 : i32
    %c0_i32_0 = arith.constant 0 : i32
    %c0_i32_1 = arith.constant 0 : i32
    return %c0_i32, %c0_i32_0 : i32, i32
  }
  func.func @transform_3(%arg0: i32) -> (i32, i32, i32) {
    %c0_i32 = arith.constant 0 : i32
    %c0_i32_0 = arith.constant 0 : i32
    %c0_i32_1 = arith.constant 0 : i32
    return %arg0, %c0_i32, %c0_i32_0 : i32, i32, i32
  }
}

</mosaic_0001>

<bundles_post_ra>
// kernel: conv2d_forward.1
= control target key start
LH: loop header
LB: loop body
LE: loop exit
PB: predicated region body
PF: predicated region fallthrough
CT: control target
= control target key end

     0   :  { %s632_s22 = smov 126   ;;  %s633_s23 = smov 127   ;;  %vm55_vm0 = vcmask 1031168   ;;  %vm34_vm1 = vcmask 1039360   ;;  %vm78_vm2 = vcmask 916480   ;;  %vm97_vm3 = vcmask 908288   ;;  %s881_s0 = inlined_call_operand.vmem [shape: f32[2,3,290], index: 0, kind: input, shape index: {}]   ;;  %s882_s2 = inlined_call_operand.vmem [shape: f32[8,1], index: 2, kind: input, shape index: {}]   ;;  %s883_s1 = inlined_call_operand.vmem [shape: f32[8,27], index: 1, kind: input, shape index: {}]   ;;  %s884_s3 = inlined_call_operand.vmem [shape: f32[2,8,256], index: 3, kind: output, shape index: {}]  }
   0x1   :  { %v42_v0 = vld [vmem:[%s881_s0 + $0x8] sm:$0x7]  ;;  %v41_v2 = vld [vmem:[%s881_s0] sm:$0x77]  ;;  %s634_s28 = smov 112   ;;  %s635_s8 = smov 111  }
   0x2   :  { %v21_v1 = vld [vmem:[%s881_s0 + $0x8] sm:$0x7]  ;;  %v48_v3 = vrot.slane %v42_v0, 2  ;;  %v45_v5 = vcombine.high %v41_v2, %v41_v2  ;;  %v20_v6 = vld [vmem:[%s881_s0] sm:$0x77]  ;;  %s636_s9 = smov 110  }
   0x3   :  { %v27_v4 = vrot.slane %v21_v1, 5  ;;  %v24_v7 = vcombine.high %v20_v6, %v20_v6  ;;  %v64_v8 = vld [vmem:[%s881_s0] sm:$0x77]  ;;  %v65_v12 = vld [vmem:[%s881_s0 + $0x8] sm:$0x7]  ;;  %v46_v22 = vrot.slane %v41_v2, 2 }
   0x4   :  { %53 = vrot.lane.b32.xlu1 %v48_v3, %s632_s22  ;;  %v47_v9 = vrot.slane %v45_v5, 2  ;;  %v68_v10 = vcombine.high %v64_v8, %v64_v8  ;;  %v71_v13 = vrot.slane %v65_v12, 7  ;;  %v104_v15 = vld [vmem:[%s881_s0] sm:$0x77]  ;;  %v105_v19 = vld [vmem:[%s881_s0 + $0x8] sm:$0x7] }
   0x5   :  { %32 = vrot.lane.b32.xlu0 %v27_v4, %s633_s23  ;;  %v26_v11 = vrot.slane %v24_v7, 5  ;;  %v615_v16 = vld [vmem:[%s881_s0 + $0x8] ss:$0 sps:$4 sm:$0x77]   ;;  %v108_v17 = vcombine.high %v104_v15, %v104_v15  ;;  %v85_v18 = vld [vmem:[%s881_s0] sm:$0x77] }
   0x6   :  { %v70_v14 = vrot.slane %v68_v10, 7  ;;  %v111_v20 = vrot.slane %v105_v19, 1  ;;  %v25_v23 = vrot.slane %v20_v6, 5  ;;  %v14_v24 = vld [vmem:[%s881_s0] sm:$0x77]  ;;  %v89_v27 = vcombine.low %v85_v18, %v85_v18  ;;  %s637_s18 = smov 96  }
   0x7   :  { %v110_v21 = vrot.slane %v108_v17, 1  ;;  %v127_v25 = vld [vmem:[%s881_s0] sm:$0x77]  ;;  %v16_v26 = vcombine.high %v14_v24, %v14_v24  ;;  %18 = vst [vmem:[#allocation2] sm:$0x7] %v14_v24  ;;  %v69_v28 = vrot.slane %v64_v8, 7 }
   0x8   :  { %51 = vrot.lane.b32.xlu1 %v47_v9, %s632_s22  ;;  %v131_v29 = vcombine.high %v127_v25, %v127_v25  ;;  %v148_v30 = vld [vmem:[%s881_s0] sm:$0x77]  ;;  %v109_v32 = vrot.slane %v104_v15, 1  ;;  %v128_v34 = vld [vmem:[%s881_s0 + $0x8] sm:$0x7]  ;;  %s638_s25 = smov 95  }
   0x9   :  { %30 = vrot.lane.b32.xlu0 %v26_v11, %s633_s23  ;;  %19 = vst [vmem:[#allocation2 + $0x8] sm:$0x7] %v16_v26  ;;  %v152_v33 = vcombine.high %v148_v30, %v148_v30  ;;  %v134_v36 = vrot.slane %v128_v34, 6  ;;  %v169_v37 = vld [vmem:[%s881_s0] sm:$0x77]  ;;  %s639_s26 = smov 94  }
   0xa   :  { %v133_v31 = vrot.slane %v131_v29, 6  ;;  %v149_v38 = vld [vmem:[%s881_s0 + $0x8] sm:$0x7]  ;;  %v173_v39 = vcombine.high %v169_v37, %v169_v37  ;;  %v132_v41 = vrot.slane %v127_v25, 6  ;;  %v558_v43 = vld [vmem:[%s881_s0 + $0xc] sm:$0x77] }
   0xb   :  { %v154_v35 = vrot.slane %v152_v33, 3  ;;  %v155_v40 = vrot.slane %v149_v38, 3  ;;  %v170_v42 = vld [vmem:[%s881_s0 + $0x8] sm:$0x7]  ;;  %v153_v44 = vrot.slane %v148_v30, 3  ;;  %v297_v45 = vcombine.high %v558_v43, %v558_v43  ;;  %v461_v24 = vld [vmem:[%s882_s2] sm:$0xff] }
   0xc   :  { %76 = vrot.lane.b32.xlu1 %v71_v13, %s634_s28  ;;  %v559_v46 = vld [vmem:[%s881_s0 + $0x14] sm:$0x7]  ;;  %v560_v47 = vld [vmem:[%s881_s0 + $0xc] sm:$0x77]  ;;  %v298_v3 = vrot.slane %v558_v43, 5  ;;  %vm118_vm4 = vcmask 900096  }
   0xd   :  { %74 = vrot.lane.b32.xlu0 %v70_v14, %s634_s28  ;;  %v300_v48 = vrot.slane %v559_v46, 5  ;;  %v299_v49 = vrot.slane %v297_v45, 5  ;;  %v317_v50 = vcombine.high %v560_v47, %v560_v47  ;;  %v561_v51 = vld [vmem:[%s881_s0 + $0x14] sm:$0x7]  ;;  %v562_v52 = vld [vmem:[%s881_s0 + $0xc] sm:$0x77] }
   0xe   :  { %v320_v53 = vrot.slane %v561_v51, 2  ;;  %v339_v55 = vcombine.high %v562_v52, %v562_v52  ;;  %v563_v56 = vld [vmem:[%s881_s0 + $0x14] sm:$0x7]  ;;  %v566_v59 = vld [vmem:[%s881_s0 + $0xc] sm:$0x77]  ;;  %v318_v2 = vrot.slane %v560_v47, 2 }
   0xf   :  { %v319_v54 = vrot.slane %v317_v50, 2  ;;  %v342_v57 = vrot.slane %v563_v56, 7  ;;  %v624_v60 = vld [vmem:[%s881_s0 + $0x14] ss:$0 sps:$4 sm:$0x77]   ;;  %v377_v61 = vcombine.high %v566_v59, %v566_v59  ;;  %v340_v6 = vrot.slane %v562_v52, 7 }
  0x10   :  { %95 = vrot.lane.b32.xlu1 %v615_v16, %s635_s8  ;;  %v341_v58 = vrot.slane %v339_v55, 7  ;;  %v564_v62 = vld [vmem:[%s881_s0 + $0xc] sm:$0x77]  ;;  %v567_v63 = vld [vmem:[%s881_s0 + $0x14] sm:$0x7]  ;;  %v378_v10 = vrot.slane %v566_v59, 1 }
  0x11   :  { %93 = vrot.lane.b32.xlu0 %v85_v18, %s635_s8  ;;  %v380_v0 = vrot.slane %v567_v63, 1  ;;  %v379_v1 = vrot.slane %v377_v61, 1  ;;  %v568_v4 = vld [vmem:[%s881_s0 + $0xc] sm:$0x77]  ;;  %v359_v5 = vcombine.low %v564_v62, %v564_v62  ;;  %v569_v12 = vld [vmem:[%s881_s0 + $0x14] sm:$0x7] }
  0x12   :  { %v399_v7 = vcombine.high %v568_v4, %v568_v4  ;;  %v570_v8 = vld [vmem:[%s881_s0 + $0xc] sm:$0x77]  ;;  %v402_v14 = vrot.slane %v569_v12, 6  ;;  %v571_v16 = vld [vmem:[%s881_s0 + $0x14] sm:$0x7]  ;;  %v400_v19 = vrot.slane %v568_v4, 6 }
  0x13   :  { %v419_v11 = vcombine.high %v570_v8, %v570_v8  ;;  %v572_v15 = vld [vmem:[%s881_s0 + $0xc] sm:$0x77]  ;;  %v422_v18 = vrot.slane %v571_v16, 3  ;;  %vm141_vm5 = vcmask 785408   ;;  %vm162_vm6 = vcmask 777216  }
  0x14   :  { %116 = vrot.lane.b32.xlu1 %v111_v20, %s636_s9  ;;  %v401_v9 = vrot.slane %v399_v7, 6  ;;  %v439_v17 = vcombine.high %v572_v15, %v572_v15  ;;  %v573_v20 = vld [vmem:[%s881_s0 + $0x14] sm:$0x7]  ;;  %vm180_vm7 = vcmask 769024   ;;  %vm206_vm8 = vcmask 1042432  }
  0x15   :  { %114 = vrot.lane.b32.xlu0 %v110_v21, %s636_s9  ;;  %v421_v13 = vrot.slane %v419_v11, 3  ;;  %v420_v21 = vrot.slane %v570_v8, 3  ;;  %vm642_vm9 = vmmov 1   ;;  %vm202_vm11 = vcmask 220160  }
  0x16   :  { %vm833_vm10 = vmpackc.low %vm206_vm8, %vm642_vm9 }
  0x18   :  { %49 = vrot.lane.b32.xlu1 %v46_v22, %s632_s22  ;;  %v640_v22 = vmov 0.0  }
  0x19   :  { %28 = vrot.lane.b32.xlu0 %v25_v23, %s633_s23  ;;  %277 = vmatprep.mubr.f32.mxu0 %v640_v22  ;;  %v641_v23 = vmov 0  }
  0x1a   :  { %540 = vmatprep.mubr.f32.mxu1 %v640_v22  ;;  %611 = vset.pattern.permute.xlu1 %v641_v23 }
  0x1b   :  { %610 = vset.pattern.permute.xlu0 %v641_v23 }
  0x1c   :  { %91 = vrot.lane.b32.xlu1 %v89_v27, %s635_s8 }
  0x1d   :  { %72 = vrot.lane.b32.xlu0 %v69_v28, %s634_s28 }
  0x20   :  { %137 = vrot.lane.b32.xlu1 %v133_v31, %s637_s18  ;;  %v557_v31 = vld [vmem:[%s881_s0 + $0xc] sm:$0x77] }
  0x21   :  { %112 = vrot.lane.b32.xlu0 %v109_v32, %s636_s9 }
  0x24   :  { %158 = vrot.lane.b32.xlu1 %v154_v35, %s638_s25  ;;  %v289_v35 = vcombine.high %v557_v31, %v557_v31 }
  0x25   :  { %139 = vrot.lane.b32.xlu0 %v134_v36, %s637_s18 }
  0x28   :  { %176 = vrot.lane.b32.xlu1 %v173_v39, %s639_s26 }
  0x29   :  { %160 = vrot.lane.b32.xlu0 %v155_v40, %s638_s25 }
  0x2c   :  { %135 = vrot.lane.b32.xlu1 %v132_v41, %s637_s18 }
  0x2d   :  { %178 = vrot.lane.b32.xlu0 %v170_v42, %s639_s26 }
  0x30   :  { %174 = vrot.lane.b32.xlu1 %v169_v37, %s639_s26 }
  0x31   :  { %156 = vrot.lane.b32.xlu0 %v153_v44, %s638_s25 }
  0x34   :  { %305 = vrot.lane.b32.xlu1 %v300_v48, %s633_s23 }
  0x35   :  { %303 = vrot.lane.b32.xlu0 %v299_v49, %s633_s23 }
  0x38   :  { %325 = vrot.lane.b32.xlu1 %v320_v53, %s632_s22 }
  0x39   :  { %323 = vrot.lane.b32.xlu0 %v319_v54, %s632_s22 }
  0x3c   :  { %347 = vrot.lane.b32.xlu1 %v342_v57, %s634_s28 }
  0x3d   :  { %345 = vrot.lane.b32.xlu0 %v341_v58, %s634_s28 }
  0x40   :  { %365 = vrot.lane.b32.xlu1 %v624_v60, %s635_s8 }
  0x41   :  { %363 = vrot.lane.b32.xlu0 %v564_v62, %s635_s8 }
  0x44   :  { %385 = vrot.lane.b32.xlu1 %v380_v0, %s636_s9 }
  0x45   :  { %383 = vrot.lane.b32.xlu0 %v379_v1, %s636_s9 }
  0x48   :  { %321 = vrot.lane.b32.xlu1 %v318_v2, %s632_s22 }
  0x49   :  { %301 = vrot.lane.b32.xlu0 %v298_v3, %s633_s23 }
  0x4c   :  { %361 = vrot.lane.b32.xlu1 %v359_v5, %s635_s8 }
  0x4d   :  { %343 = vrot.lane.b32.xlu0 %v340_v6, %s634_s28 }
  0x50   :  { %405 = vrot.lane.b32.xlu1 %v401_v9, %s637_s18 }
  0x51   :  { %381 = vrot.lane.b32.xlu0 %v378_v10, %s636_s9 }
  0x54   :  { %425 = vrot.lane.b32.xlu1 %v421_v13, %s638_s25 }
  0x55   :  { %407 = vrot.lane.b32.xlu0 %v402_v14, %s637_s18 }
  0x58   :  { %442 = vrot.lane.b32.xlu1 %v439_v17, %s639_s26 }
  0x59   :  { %427 = vrot.lane.b32.xlu0 %v422_v18, %s638_s25 }
  0x5c   :  { %403 = vrot.lane.b32.xlu1 %v400_v19, %s637_s18 }
  0x5d   :  { %444 = vrot.lane.b32.xlu0 %v573_v20, %s639_s26 }
  0x60   :  { %440 = vrot.lane.b32.xlu1 %v572_v15, %s639_s26 }
  0x61   :  { %423 = vrot.lane.b32.xlu0 %v420_v21, %s638_s25 }
  0x64   :  { %464 = vperm.xlu1 %611, %v461_v24  }
  0x65   :  { %199 = vperm.xlu0 %610, %v461_v24   ;;  %v845_v24 = vld [vmem:[%s883_s1] sm:$0xff] }
  0x76   :  { %v54_v25 = vpop.permute.xlu1 %53 }
  0x77   :  { %v33_v26 = vpop.permute.xlu0 %32 }
  0x7a   :  { %v52_v27 = vpop.permute.xlu1 %51 }
  0x7b   :  { %v31_v28 = vpop.permute.xlu0 %30  ;;  %v57_v29 = vsel %vm55_vm0, %v52_v27, %v54_v25 }
  0x7c   :  { %v36_v30 = vsel %vm34_vm1, %v31_v28, %v33_v26  ;;  %61 = vst [vmem:[#allocation2 + $0x18] ss:$-12 sps:$4 sm:$0xc1] %v57_v29  }
  0x7d   :  { %40 = vst [vmem:[#allocation2 + $0x8] sm:$0x38] %v36_v30 }
  0x7e   :  { %v77_v32 = vpop.permute.xlu1 %76 }
  0x7f   :  { %v75_v33 = vpop.permute.xlu0 %74 }
  0x80   :  { %v80_v34 = vsel %vm78_vm2, %v75_v33, %v77_v32 }
  0x81   :  { %84 = vst [vmem:[#allocation2 + $0x18] sm:$0xe] %v80_v34 }
  0x82   :  { %v96_v36 = vpop.permute.xlu1 %95 }
  0x83   :  { %v94_v37 = vpop.permute.xlu0 %93 }
  0x84   :  { %v99_v38 = vsel %vm97_vm3, %v94_v37, %v96_v36  ;;  %v189_v39 = vld [vmem:[#allocation2 + $0x8] sm:$0xff] }
  0x85   :  { %103 = vst [vmem:[#allocation2 + $0x18] sm:$0x70] %v99_v38  ;;  %292 = vst [vmem:[#allocation2 + $0x8] sm:$0x7] %v289_v35 }
  0x86   :  { %v117_v40 = vpop.permute.xlu1 %116 }
  0x87   :  { %v115_v41 = vpop.permute.xlu0 %114 }
  0x88   :  { %v120_v42 = vsel %vm118_vm4, %v115_v41, %v117_v40 }
  0x89   :  { %124 = vst [vmem:[#allocation2 + $0x28] ss:$-12 sps:$4 sm:$0x83] %v120_v42  }
  0x8a   :  { %v50_v43 = vpop.permute.xlu1 %49 }
  0x8b   :  { %v29_v44 = vpop.permute.xlu0 %28  ;;  %v56_v45 = vsel %vm55_vm0, %v50_v43, %v52_v27 }
  0x8c   :  { %v35_v46 = vsel %vm34_vm1, %v29_v44, %v31_v28  ;;  %60 = vst [vmem:[#allocation2 + $0x10] ss:$-12 sps:$4 sm:$0xc1] %v56_v45  }
  0x8d   :  { %39 = vst [vmem:[#allocation2] sm:$0x38] %v35_v46 }
  0x8e   :  { %v92_v47 = vpop.permute.xlu1 %91 }
  0x8f   :  { %v73_v48 = vpop.permute.xlu0 %72  ;;  %v98_v49 = vsel %vm97_vm3, %v92_v47, %v94_v37 }
  0x90   :  { %v79_v50 = vsel %vm78_vm2, %v73_v48, %v75_v33  ;;  %v191_v51 = vld [vmem:[#allocation2 + $0x18] sm:$0xff]  ;;  %102 = vst [vmem:[#allocation2 + $0x10] sm:$0x70] %v98_v49 }
  0x91   :  { %83 = vst [vmem:[#allocation2 + $0x10] sm:$0xe] %v79_v50  ;;  %v579_v52 = vpack.c.bf16 %v191_v51, %v189_v39 }
  0x92   :  { %v138_v53 = vpop.permute.xlu1 %137 }
  0x93   :  { %v113_v54 = vpop.permute.xlu0 %112  ;;  %580 = vmatprep.subr.bf16.mxu0 %v579_v52 }
  0x94   :  { %v119_v55 = vsel %vm118_vm4, %v113_v54, %v115_v41  ;;  %v188_v56 = vld [vmem:[#allocation2] sm:$0xff] }
  0x95   :  { %123 = vst [vmem:[#allocation2 + $0x20] ss:$-12 sps:$4 sm:$0x83] %v119_v55   ;;  %291 = vst [vmem:[#allocation2] sm:$0x7] %v557_v31 }
  0x96   :  { %v159_v57 = vpop.permute.xlu1 %158 }
  0x97   :  { %v140_v58 = vpop.permute.xlu0 %139 }
  0x98   :  { %v143_v59 = vsel %vm141_vm5, %v138_v53, %v140_v58 }
  0x99   :  { %147 = vst [vmem:[#allocation2 + $0x28] sm:$0x1c] %v143_v59 }
  0x9a   :  { %v177_v60 = vpop.permute.xlu1 %176 }
  0x9b   :  { %v161_v61 = vpop.permute.xlu0 %160 }
  0x9c   :  { %v164_v62 = vsel %vm162_vm6, %v159_v57, %v161_v61  ;;  %v190_v63 = vld [vmem:[#allocation2 + $0x10] sm:$0xff] }
  0x9d   :  { %168 = vst [vmem:[#allocation2 + $0x28] sm:$0xe0] %v164_v62  ;;  %v581_v0 = vpack.c.bf16 %v190_v63, %v188_v56 }
  0x9e   :  { %v136_v1 = vpop.permute.xlu1 %135 }
  0x9f   :  { %v179_v2 = vpop.permute.xlu0 %178  ;;  %582 = vmatpush1.bf16.msra.mxu0 %v581_v0  ;;  %v142_v3 = vsel %vm141_vm5, %v136_v1, %v138_v53 }
  0xa0   :  { %v182_v4 = vsel %vm180_vm7, %v177_v60, %v179_v2  ;;  %146 = vst [vmem:[#allocation2 + $0x20] sm:$0x1c] %v142_v3 }
  0xa1   :  { %186 = vst [vmem:[#allocation2 + $0x38] sm:$0x7] %v182_v4 }
  0xa2   :  { %v175_v5 = vpop.permute.xlu1 %174 }
  0xa3   :  { %v157_v6 = vpop.permute.xlu0 %156  ;;  %v181_v7 = vsel %vm180_vm7, %v175_v5, %v177_v60 }
  0xa4   :  { %v163_v8 = vsel %vm162_vm6, %v157_v6, %v159_v57  ;;  %185 = vst [vmem:[#allocation2 + $0x30] sm:$0x7] %v181_v7  ;;  %v193_v12 = vld [vmem:[#allocation2 + $0x28] sm:$0xff] }
  0xa5   :  { %167 = vst [vmem:[#allocation2 + $0x20] sm:$0xe0] %v163_v8 }
  0xa6   :  { %v306_v9 = vpop.permute.xlu1 %305 }
  0xa7   :  { %v304_v10 = vpop.permute.xlu0 %303 }
  0xa8   :  { %v308_v11 = vsel %vm34_vm1, %v304_v10, %v306_v9  ;;  %v195_v13 = vld [vmem:[#allocation2 + $0x38] sm:$0x7] }
  0xa9   :  { %312 = vst [vmem:[#allocation2 + $0x8] sm:$0x38] %v308_v11  ;;  %v583_v15 = vpack.c.bf16 %v195_v13, %v193_v12 }
  0xaa   :  { %v326_v16 = vpop.permute.xlu1 %325 }
  0xab   :  { %v324_v17 = vpop.permute.xlu0 %323  ;;  %585 = vmatprep.subr.msk.bf16.mxu0 %vm833_vm10, %v583_v15  ;;  %v194_v20 = vld [vmem:[#allocation2 + $0x30] sm:$0x7] }
  0xac   :  { %v328_v18 = vsel %vm55_vm0, %v324_v17, %v326_v16  ;;  %v192_v19 = vld [vmem:[#allocation2 + $0x20] sm:$0xff] }
  0xad   :  { %332 = vst [vmem:[#allocation2 + $0x18] ss:$-12 sps:$4 sm:$0xc1] %v328_v18   ;;  %v586_v21 = vpack.c.bf16 %v194_v20, %v192_v19 }
  0xae   :  { %v348_v22 = vpop.permute.xlu1 %347 }
  0xaf   :  { %v346_v23 = vpop.permute.xlu0 %345  ;;  %588 = vmatpush1.bf16.msk.msra.mxu0 %vm833_vm10, %v586_v21 }
  0xb0   :  { %v350_v25 = vsel %vm78_vm2, %v346_v23, %v348_v22 }
  0xb1   :  { %354 = vst [vmem:[#allocation2 + $0x18] sm:$0xe] %v350_v25 }
  0xb2   :  { %556 = vmatmul.mubr.msk.f32.vlgmr.msra.gmra.mrb[0].mxu0 %vm202_vm11, %v845_v24  ;;  %v366_v26 = vpop.permute.xlu1 %365 }
  0xb3   :  { %v364_v27 = vpop.permute.xlu0 %363 }
  0xb4   :  { %v368_v28 = vsel %vm97_vm3, %v364_v27, %v366_v26  ;;  %v454_v40 = vld [vmem:[#allocation2 + $0x8] sm:$0xff] }
  0xb5   :  { %372 = vst [vmem:[#allocation2 + $0x18] sm:$0x70] %v368_v28 }
  0xb6   :  { %v386_v29 = vpop.permute.xlu1 %385 }
  0xb7   :  { %v384_v30 = vpop.permute.xlu0 %383 }
  0xb8   :  { %v388_v31 = vsel %vm118_vm4, %v384_v30, %v386_v29 }
  0xb9   :  { %392 = vst [vmem:[#allocation2 + $0x28] ss:$-12 sps:$4 sm:$0x83] %v388_v31  }
  0xba   :  { %v322_v32 = vpop.permute.xlu1 %321 }
  0xbb   :  { %v302_v33 = vpop.permute.xlu0 %301  ;;  %v327_v34 = vsel %vm55_vm0, %v322_v32, %v324_v17 }
  0xbc   :  { %v307_v35 = vsel %vm34_vm1, %v302_v33, %v304_v10  ;;  %331 = vst [vmem:[#allocation2 + $0x10] ss:$-12 sps:$4 sm:$0xc1] %v327_v34  }
  0xbd   :  { %311 = vst [vmem:[#allocation2] sm:$0x38] %v307_v35 }
  0xbe   :  { %v362_v36 = vpop.permute.xlu1 %361 }
  0xbf   :  { %v344_v37 = vpop.permute.xlu0 %343  ;;  %v367_v38 = vsel %vm97_vm3, %v362_v36, %v364_v27 }
  0xc0   :  { %v349_v39 = vsel %vm78_vm2, %v344_v37, %v346_v23  ;;  %v456_v41 = vld [vmem:[#allocation2 + $0x18] sm:$0xff]  ;;  %371 = vst [vmem:[#allocation2 + $0x10] sm:$0x70] %v367_v38 }
  0xc1   :  { %353 = vst [vmem:[#allocation2 + $0x10] sm:$0xe] %v349_v39  ;;  %v589_v42 = vpack.c.bf16 %v456_v41, %v454_v40 }
  0xc2   :  { %v406_v43 = vpop.permute.xlu1 %405 }
  0xc3   :  { %v382_v44 = vpop.permute.xlu0 %381  ;;  %590 = vmatprep.subr.bf16.mxu1 %v589_v42 }
  0xc4   :  { %v387_v45 = vsel %vm118_vm4, %v382_v44, %v384_v30  ;;  %v453_v52 = vld [vmem:[#allocation2] sm:$0xff] }
  0xc5   :  { %391 = vst [vmem:[#allocation2 + $0x20] ss:$-12 sps:$4 sm:$0x83] %v387_v45  }
  0xc6   :  { %v426_v46 = vpop.permute.xlu1 %425 }
  0xc7   :  { %v408_v47 = vpop.permute.xlu0 %407 }
  0xc8   :  { %v410_v48 = vsel %vm141_vm5, %v406_v43, %v408_v47 }
  0xc9   :  { %414 = vst [vmem:[#allocation2 + $0x28] sm:$0x1c] %v410_v48 }
  0xca   :  { %v443_v49 = vpop.permute.xlu1 %442 }
  0xcb   :  { %v428_v50 = vpop.permute.xlu0 %427 }
  0xcc   :  { %v430_v51 = vsel %vm162_vm6, %v426_v46, %v428_v50  ;;  %v455_v53 = vld [vmem:[#allocation2 + $0x10] sm:$0xff] }
  0xcd   :  { %434 = vst [vmem:[#allocation2 + $0x28] sm:$0xe0] %v430_v51  ;;  %v591_v54 = vpack.c.bf16 %v455_v53, %v453_v52 }
  0xce   :  { %v404_v55 = vpop.permute.xlu1 %403 }
  0xcf   :  { %v445_v56 = vpop.permute.xlu0 %444  ;;  %592 = vmatpush1.bf16.msra.mxu1 %v591_v54  ;;  %v409_v57 = vsel %vm141_vm5, %v404_v55, %v406_v43 }
  0xd0   :  { %v447_v58 = vsel %vm180_vm7, %v443_v49, %v445_v56  ;;  %413 = vst [vmem:[#allocation2 + $0x20] sm:$0x1c] %v409_v57 }
  0xd1   :  { %451 = vst [vmem:[#allocation2 + $0x38] sm:$0x7] %v447_v58 }
  0xd2   :  { %v441_v59 = vpop.permute.xlu1 %440 }
  0xd3   :  { %v424_v60 = vpop.permute.xlu0 %423  ;;  %v446_v61 = vsel %vm180_vm7, %v441_v59, %v443_v49 }
  0xd4   :  { %v429_v62 = vsel %vm162_vm6, %v424_v60, %v426_v46  ;;  %450 = vst [vmem:[#allocation2 + $0x30] sm:$0x7] %v446_v61  ;;  %v458_v63 = vld [vmem:[#allocation2 + $0x28] sm:$0xff] }
  0xd5   :  { %433 = vst [vmem:[#allocation2 + $0x20] sm:$0xe0] %v429_v62 }
  0xd8   :  { %v460_v0 = vld [vmem:[#allocation2 + $0x38] sm:$0x7] }
  0xd9   :  { %v593_v1 = vpack.c.bf16 %v460_v0, %v458_v63 }
  0xdb   :  { %595 = vmatprep.subr.msk.bf16.mxu1 %vm833_vm10, %v593_v1  ;;  %v459_v3 = vld [vmem:[#allocation2 + $0x30] sm:$0x7] }
  0xdc   :  { %v457_v2 = vld [vmem:[#allocation2 + $0x20] sm:$0xff] }
  0xdd   :  { %v596_v4 = vpack.c.bf16 %v459_v3, %v457_v2 }
  0xdf   :  { %598 = vmatpush1.bf16.msk.msra.mxu1 %vm833_vm10, %v596_v4 }
  0xe2   :  { %576 = vmatmul.mubr.msk.f32.vlgmr.msra.gmra.mrb[0].mxu1 %vm202_vm11, %v845_v24 }
  0xe3   :  { %v465_v10 = vpop.permute.xlu1 %464 }
  0xe4   :  { %v200_v5 = vpop.permute.xlu0 %199 }
 0x185   :  { %v279_v6 = vpop.f32.mrb[0].mxu0 }
 0x186   :  { %v280_v7 = vadd.f32 %v279_v6, %v200_v5  ;;  %v281_v8 = vpop.f32.mrb[1].mxu0 }
 0x187   :  { %v282_v9 = vadd.f32 %v281_v8, %v200_v5 }
 0x188   :  { %284 = vst [vmem:[%s884_s3] sm:$0xff] %v280_v7 }
 0x189   :  { %285 = vst [vmem:[%s884_s3 + $0x8] sm:$0xff] %v282_v9 }
 0x1b5   :  { %v542_v11 = vpop.f32.mrb[0].mxu1 }
 0x1b6   :  { %v543_v12 = vadd.f32 %v542_v11, %v465_v10  ;;  %v544_v13 = vpop.f32.mrb[1].mxu1 }
 0x1b7   :  { %v545_v14 = vadd.f32 %v544_v13, %v465_v10 }
 0x1b8   :  { %577 = vst [vmem:[%s884_s3 + $0x10] sm:$0xff] %v543_v12 }
 0x1b9   :  { %578 = vst [vmem:[%s884_s3 + $0x18] sm:$0xff] %v545_v14 }

</bundles_post_ra>
